<compile_context>
chip_gen: v5e
topology: v5e:2x2
jax: 0.10.0
libtpu: 0.0.40
codegen_flags: <defaults>
</compile_context>

<pallas_src>
import functools
import numpy as np
import jax
import jax.numpy as jnp
from jax.experimental import pallas as pl
from jax.experimental.pallas import tpu as pltpu


# ---------------------------------------------------------------------------
# Helpers
# ---------------------------------------------------------------------------

def _round_up(x, m):
    return (x + m - 1) // m * m


def _pad_batch(x, b_pad):
    b = x.shape[0]
    if b_pad == b:
        return x
    pad = [(0, b_pad - b)] + [(0, 0)] * (x.ndim - 1)
    return jnp.pad(x, pad)


def _vmem_capacity_bytes():
    """Physical VMEM of the attached TPU generation (conservative fallback)."""
    try:
        info = pltpu.get_tpu_info()
        cap = int(getattr(info, "vmem_capacity_bytes"))
        if cap > 0:
            return cap
    except Exception:
        pass
    return 64 * 1024 * 1024  # v7x per-core VMEM (smallest of the targets)


def _choose_tile(B, C, n_experts, elem_bytes, vmem_limit):
    """Largest batch tile whose lane-padded VMEM footprint fits the budget.

    Footprint per batch row (lane dim padded to 128):
      * input tiles, double-buffered, native dtype:  n_experts * 2 * c_pad * elem
      * in-kernel f32 temporaries (~3 per expert):   n_experts * 3 * c_pad * 4
      * per-row accumulator rows + resident targets: (n_experts + 2) * 128 * 4
    """
    c_pad = _round_up(max(C, 1), 128)
    per_row = (n_experts * 2 * c_pad * elem_bytes
               + n_experts * 3 * c_pad * 4
               + (n_experts + 2) * 128 * 4)
    budget = (vmem_limit * 3) // 5          # leave headroom for pipeline bookkeeping
    tb = budget // max(per_row, 1)
    tb = max(8, (tb // 8) * 8)              # sublane multiple
    tb = min(tb, _round_up(B, 8))           # never larger than the (padded) batch
    return int(tb)


# ---------------------------------------------------------------------------
# Kernels
# ---------------------------------------------------------------------------

def _ce_rows(x_f32, mask, valid):
    """Per-row (logsumexp - target_logit), zeroed on padded rows.  Shape (TB, 1)."""
    m = jnp.max(x_f32, axis=-1, keepdims=True)
    s = jnp.sum(jnp.exp(x_f32 - m), axis=-1, keepdims=True)
    lse = m + jnp.log(s)
    tgt_logit = jnp.sum(jnp.where(mask, x_f32, 0.0), axis=-1, keepdims=True)
    return jnp.where(valid, lse - tgt_logit, 0.0)


def _tade3_kernel(tgt_ref, e1_ref, e2_ref, e3_ref, b2_ref, b3_ref, out_ref,
                  *, batch_size, steps_per_split, targets_resident):
    """Three-expert biased cross-entropy, accumulated per-row into the output block.

    tgt_ref : (B_pad, 1) int32 (resident)  or (TB, 1) int32 (per-step block)
    e*_ref  : (TB, C) native-dtype expert logits
    b2_ref  : (1, C)  f32  log prior                         (expert 2 bias)
    b3_ref  : (1, C)  f32  log prior - tau * log rev prior   (expert 3 bias)
    out_ref : (1, 3, TB, 1) f32 VMEM output block, revisited across the inner
              (batch) grid axis -> per-row accumulator, one row per split.
    """
    p = pl.program_id(0)          # batch split (parallel across TensorCores)
    i = pl.program_id(1)          # batch tile within the split (arbitrary)
    TB, C = e1_ref.shape

    @pl.when(i == 0)
    def _():
        out_ref[...] = jnp.zeros(out_ref.shape, out_ref.dtype)

    row0 = (p * steps_per_split + i) * TB
    if targets_resident:
        tgt = tgt_ref[pl.ds(pl.multiple_of(row0, 8), TB), :]
    else:
        tgt = tgt_ref[...]

    cls_iota = jax.lax.broadcasted_iota(jnp.int32, (TB, C), 1)
    mask = cls_iota == tgt                                     # reused by all 3 experts
    row_id = row0 + jax.lax.broadcasted_iota(jnp.int32, (TB, 1), 0)
    valid = row_id < batch_size                                # masks batch padding

    x1 = e1_ref[...].astype(jnp.float32)
    x2 = e2_ref[...].astype(jnp.float32) + b2_ref[...]
    x3 = e3_ref[...].astype(jnp.float32) + b3_ref[...]

    out_ref[0, 0] += _ce_rows(x1, mask, valid)
    out_ref[0, 1] += _ce_rows(x2, mask, valid)
    out_ref[0, 2] += _ce_rows(x3, mask, valid)


def _ce1_kernel(tgt_ref, e_ref, out_ref,
                *, batch_size, steps_per_split, targets_resident):
    """Plain mean cross-entropy for a single logits tensor (extra_info=None path)."""
    p = pl.program_id(0)
    i = pl.program_id(1)
    TB, C = e_ref.shape

    @pl.when(i == 0)
    def _():
        out_ref[...] = jnp.zeros(out_ref.shape, out_ref.dtype)

    row0 = (p * steps_per_split + i) * TB
    if targets_resident:
        tgt = tgt_ref[pl.ds(pl.multiple_of(row0, 8), TB), :]
    else:
        tgt = tgt_ref[...]

    cls_iota = jax.lax.broadcasted_iota(jnp.int32, (TB, C), 1)
    mask = cls_iota == tgt
    row_id = row0 + jax.lax.broadcasted_iota(jnp.int32, (TB, 1), 0)
    valid = row_id < batch_size

    x = e_ref[...].astype(jnp.float32)
    out_ref[0, 0] += _ce_rows(x, mask, valid)


# ---------------------------------------------------------------------------
# Wrappers
# ---------------------------------------------------------------------------

def _grid_geometry(B, TB):
    steps = -(-B // TB)
    nsplit = 2 if steps >= 2 else 1          # v7x: one split per TensorCore
    spp = -(-steps // nsplit)                # steps per split
    b_pad = nsplit * spp * TB
    return nsplit, spp, b_pad


def _run_tade3(target, e1, e2, e3, b2, b3, *, tile_rows=None, resident_targets=None):
    B, C = e1.shape
    elem_bytes = jnp.dtype(e1.dtype).itemsize

    vmem_cap = _vmem_capacity_bytes()
    vmem_limit = max(32 << 20, min((vmem_cap * 3) // 4, 112 << 20))
    TB = tile_rows if tile_rows is not None else _choose_tile(B, C, 3, elem_bytes, vmem_limit)
    TB = max(8, (int(TB) // 8) * 8)
    nsplit, spp, b_pad = _grid_geometry(B, TB)

    # Targets resident in VMEM (single DMA) when their lane-padded footprint is small.
    resident = (b_pad * 512) <= (4 << 20) if resident_targets is None else bool(resident_targets)

    tgt = _pad_batch(target.astype(jnp.int32).reshape(B, 1), b_pad)
    e1p = _pad_batch(e1, b_pad)
    e2p = _pad_batch(e2, b_pad)
    e3p = _pad_batch(e3, b_pad)

    if resident:
        tgt_spec = pl.BlockSpec((b_pad, 1), lambda p, i: (0, 0))
    else:
        tgt_spec = pl.BlockSpec((TB, 1), lambda p, i: (p * spp + i, 0))
    logit_spec = pl.BlockSpec((TB, C), lambda p, i: (p * spp + i, 0))
    bias_spec = pl.BlockSpec((1, C), lambda p, i: (0, 0))
    out_spec = pl.BlockSpec((1, 3, TB, 1), lambda p, i: (p, 0, 0, 0))

    cost = pl.CostEstimate(
        flops=int(6 * 3 * B * C),
        transcendentals=int(3 * B * C + 3 * B),
        bytes_accessed=int(3 * B * C * elem_bytes + B * 4 + 2 * C * 4
                           + nsplit * 3 * TB * 4),
    )

    out = pl.pallas_call(
        functools.partial(_tade3_kernel, batch_size=B, steps_per_split=spp,
                          targets_resident=resident),
        out_shape=jax.ShapeDtypeStruct((nsplit, 3, TB, 1), jnp.float32),
        grid_spec=pltpu.PrefetchScalarGridSpec(
            num_scalar_prefetch=0,
            grid=(nsplit, spp),
            in_specs=[tgt_spec, logit_spec, logit_spec, logit_spec,
                      bias_spec, bias_spec],
            out_specs=out_spec,
        ),
        compiler_params=pltpu.CompilerParams(
            dimension_semantics=("parallel", "arbitrary"),
            vmem_limit_bytes=int(vmem_limit)),
        cost_estimate=cost,
    )(tgt, e1p, e2p, e3p, b2.astype(jnp.float32), b3.astype(jnp.float32))

    # Tiny epilogue in XLA: sum per-row partials over splits & rows, divide by B.
    return jnp.sum(out, axis=(0, 2, 3)) / jnp.float32(B)   # (3,) per-expert mean CE


def _run_ce1(target, logits, *, tile_rows=None, resident_targets=None):
    B, C = logits.shape
    elem_bytes = jnp.dtype(logits.dtype).itemsize

    vmem_cap = _vmem_capacity_bytes()
    vmem_limit = max(32 << 20, min((vmem_cap * 3) // 4, 112 << 20))
    TB = tile_rows if tile_rows is not None else _choose_tile(B, C, 1, elem_bytes, vmem_limit)
    TB = max(8, (int(TB) // 8) * 8)
    nsplit, spp, b_pad = _grid_geometry(B, TB)
    resident = (b_pad * 512) <= (4 << 20) if resident_targets is None else bool(resident_targets)

    tgt = _pad_batch(target.astype(jnp.int32).reshape(B, 1), b_pad)
    lp = _pad_batch(logits, b_pad)

    if resident:
        tgt_spec = pl.BlockSpec((b_pad, 1), lambda p, i: (0, 0))
    else:
        tgt_spec = pl.BlockSpec((TB, 1), lambda p, i: (p * spp + i, 0))
    logit_spec = pl.BlockSpec((TB, C), lambda p, i: (p * spp + i, 0))
    out_spec = pl.BlockSpec((1, 1, TB, 1), lambda p, i: (p, 0, 0, 0))

    cost = pl.CostEstimate(
        flops=int(6 * B * C),
        transcendentals=int(B * C + B),
        bytes_accessed=int(B * C * elem_bytes + B * 4 + nsplit * TB * 4),
    )

    out = pl.pallas_call(
        functools.partial(_ce1_kernel, batch_size=B, steps_per_split=spp,
                          targets_resident=resident),
        out_shape=jax.ShapeDtypeStruct((nsplit, 1, TB, 1), jnp.float32),
        grid_spec=pltpu.PrefetchScalarGridSpec(
            num_scalar_prefetch=0,
            grid=(nsplit, spp),
            in_specs=[tgt_spec, logit_spec],
            out_specs=out_spec,
        ),
        compiler_params=pltpu.CompilerParams(
            dimension_semantics=("parallel", "arbitrary"),
            vmem_limit_bytes=int(vmem_limit)),
        cost_estimate=cost,
    )(tgt, lp)

    return jnp.sum(out) / jnp.float32(B)


# ---------------------------------------------------------------------------
# Module-equivalent wrapper
# ---------------------------------------------------------------------------

def reverse_prior(prior):
    # matches TADELoss.reverse_prior: value[C-1-rank(prior_i)]
    value = jnp.sort(prior)
    idx0 = jnp.argsort(prior)
    idx1 = jnp.argsort(idx0)
    idx2 = prior.shape[0] - 1 - idx1
    return value[idx2]


class TADELossPallas:
    def __init__(self, cls_num_list, s=30, tau=2):
        cls_num = np.asarray(cls_num_list, dtype=np.float64)
        prior = cls_num / cls_num.sum()
        self.prior = jnp.asarray(prior, dtype=jnp.float32)
        self.C_number = len(cls_num_list)
        self.s = s      # stored for parity; unused in forward (same as PyTorch module)
        self.tau = tau

    def __call__(self, output_logits, target, extra_info=None,
                 *, tile_rows=None, resident_targets=None):
        if extra_info is None:
            return _run_ce1(target, output_logits,
                            tile_rows=tile_rows, resident_targets=resident_targets)

        C = self.C_number
        log_prior = jnp.log(self.prior + 1e-9)
        rev = reverse_prior(self.prior)
        bias2 = log_prior.reshape(1, C)
        bias3 = (log_prior - self.tau * jnp.log(rev + 1e-9)).reshape(1, C)

        e1 = extra_info['logits'][0]
        e2 = extra_info['logits'][1]
        e3 = extra_info['logits'][2]
        per_expert = _run_tade3(target, e1, e2, e3, bias2, bias3,
                                tile_rows=tile_rows, resident_targets=resident_targets)
        return per_expert[0] + per_expert[1] + per_expert[2]


# ---------------------------------------------------------------------------
# Self-test
# ---------------------------------------------------------------------------

def _reference_loss(loss_mod, target, extra_info):
    """Plain-JAX reference (f32)."""
    def ce(logits, tgt):
        logp = jax.nn.log_softmax(logits.astype(jnp.float32), axis=-1)
        return -jnp.mean(jnp.take_along_axis(logp, tgt[:, None], axis=-1))
    lp = jnp.log(loss_mod.prior + 1e-9)
    rev = reverse_prior(loss_mod.prior)
    e1, e2, e3 = extra_info['logits']
    l = ce(e1, target)
    l += ce(e2.astype(jnp.float32) + lp[None, :], target)
    l += ce(e3.astype(jnp.float32)
            + (lp - loss_mod.tau * jnp.log(rev + 1e-9))[None, :], target)
    return l


def _reference_ce(logits, target):
    logp = jax.nn.log_softmax(logits.astype(jnp.float32), axis=-1)
    return -jnp.mean(jnp.take_along_axis(logp, target[:, None], axis=-1))


if __name__ == "__main__":
    # --- small deterministic example: 8 samples, 10 classes, long-tailed counts
    B, C = 8, 10
    cls_num_list = [100, 80, 60, 50, 40, 30, 20, 10, 5, 2]

    key = jax.random.PRNGKey(0)
    k1, k2, k3, k4 = jax.random.split(key, 4)
    expert1 = jax.random.normal(k1, (B, C), dtype=jnp.float32)
    expert2 = jax.random.normal(k2, (B, C), dtype=jnp.float32)
    expert3 = jax.random.normal(k3, (B, C), dtype=jnp.float32)
    target = jax.random.randint(k4, (B,), 0, C, dtype=jnp.int32)
    output_logits = (expert1 + expert2 + expert3) / 3.0

    loss_mod = TADELossPallas(cls_num_list, s=30, tau=2)
    extra_info = {'logits': [expert1, expert2, expert3]}

    # 3-expert TADE loss (f32 inputs)
    loss = jax.block_until_ready(loss_mod(output_logits, target, extra_info))
    ref = _reference_loss(loss_mod, target, extra_info)
    assert jnp.allclose(loss, ref, rtol=1e-5, atol=1e-5), (loss, ref)

    # 3-expert TADE loss with native bf16 logits (kernel casts to f32 internally)
    extra_bf16 = {'logits': [expert1.astype(jnp.bfloat16),
                             expert2.astype(jnp.bfloat16),
                             expert3.astype(jnp.bfloat16)]}
    loss_bf16 = jax.block_until_ready(loss_mod(output_logits, target, extra_bf16))
    ref_bf16 = _reference_loss(loss_mod, target, extra_bf16)
    assert jnp.allclose(loss_bf16, ref_bf16, rtol=1e-3, atol=1e-3), (loss_bf16, ref_bf16)

    # extra_info=None path (plain CE) — including a batch size that needs padding
    loss_none = jax.block_until_ready(loss_mod(output_logits, target, None))
    ref_none = _reference_ce(output_logits, target)
    assert jnp.allclose(loss_none, ref_none, rtol=1e-5, atol=1e-5), (loss_none, ref_none)

    loss_none5 = jax.block_until_ready(loss_mod(output_logits[:5], target[:5], None))
    ref_none5 = _reference_ce(output_logits[:5], target[:5])
    assert jnp.allclose(loss_none5, ref_none5, rtol=1e-5, atol=1e-5), (loss_none5, ref_none5)

    # --- multi-tile / two-split path (forces TB=8 -> 3 tiles -> nsplit=2, padded rows)
    B2, C2 = 21, 16
    cls2 = list(range(C2, 0, -1))
    loss_mod2 = TADELossPallas(cls2, s=30, tau=2)
    kk = jax.random.split(jax.random.PRNGKey(0), 4)
    a1 = jax.random.normal(kk[0], (B2, C2), dtype=jnp.float32)
    a2 = jax.random.normal(kk[1], (B2, C2), dtype=jnp.float32)
    a3 = jax.random.normal(kk[2], (B2, C2), dtype=jnp.float32)
    t2 = jax.random.randint(kk[3], (B2,), 0, C2, dtype=jnp.int32)
    extra2 = {'logits': [a1, a2, a3]}
    out2 = (a1 + a2 + a3) / 3.0

    got2 = jax.block_until_ready(loss_mod2(out2, t2, extra2, tile_rows=8))
    ref2 = _reference_loss(loss_mod2, t2, extra2)
    assert jnp.allclose(got2, ref2, rtol=1e-5, atol=1e-5), (got2, ref2)

    # same geometry but force the non-resident (per-step target DMA) path
    got2b = jax.block_until_ready(
        loss_mod2(out2, t2, extra2, tile_rows=8, resident_targets=False))
    assert jnp.allclose(got2b, ref2, rtol=1e-5, atol=1e-5), (got2b, ref2)

    # multi-tile plain-CE path
    got_ce2 = jax.block_until_ready(loss_mod2(out2, t2, None, tile_rows=8))
    ref_ce2 = _reference_ce(out2, t2)
    assert jnp.allclose(got_ce2, ref_ce2, rtol=1e-5, atol=1e-5), (got_ce2, ref_ce2)

    print("KERNEL_OK")
</pallas_src>

<mosaic_0001>
module attributes {stable_mosaic.version = 11 : i64} {
  func.func @_tade3_kernel(%arg0: i32, %arg1: i32, %arg2: memref<8x1xi32, #tpu.memory_space<vmem>>, %arg3: memref<8x10xf32, #tpu.memory_space<vmem>>, %arg4: memref<8x10xf32, #tpu.memory_space<vmem>>, %arg5: memref<8x10xf32, #tpu.memory_space<vmem>>, %arg6: memref<1x10xf32, #tpu.memory_space<vmem>>, %arg7: memref<1x10xf32, #tpu.memory_space<vmem>>, %arg8: memref<1x3x8x1xf32, #tpu.memory_space<vmem>>) attributes {dimension_semantics = [#tpu.dimension_semantics<parallel>, #tpu.dimension_semantics<arbitrary>], iteration_bounds = array<i64: 1, 1>, scalar_prefetch = 0 : i64, scratch_operands = 0 : i64, tpu.core_type = #tpu.core_type<tc>, window_params = [{pipeline_mode = #tpu.pipeline_mode<synchronous>, transform_indices = @transform_0, window_bounds = array<i64: 8, 1>}, {transform_indices = @transform_1, window_bounds = array<i64: 8, 10>}, {transform_indices = @transform_2, window_bounds = array<i64: 8, 10>}, {transform_indices = @transform_3, window_bounds = array<i64: 8, 10>}, {pipeline_mode = #tpu.pipeline_mode<synchronous>, transform_indices = @transform_4, window_bounds = array<i64: 1, 10>}, {pipeline_mode = #tpu.pipeline_mode<synchronous>, transform_indices = @transform_5, window_bounds = array<i64: 1, 10>}, {transform_indices = @transform_6, window_bounds = array<i64: 1, 3, 8, 1>}]} {
    %c0_i32 = arith.constant 0 : i32
    %0 = arith.cmpi eq, %arg1, %c0_i32 : i32
    %1 = arith.extui %0 : i1 to i32
    %c0_i32_0 = arith.constant 0 : i32
    %2 = arith.cmpi ne, %1, %c0_i32_0 : i32
    scf.if %2 {
      %cst_48 = arith.constant 0.000000e+00 : f32
      %92 = vector.broadcast %cst_48 : f32 to vector<1x3x8x1xf32>
      %c0_49 = arith.constant 0 : index
      %c0_50 = arith.constant 0 : index
      %c0_51 = arith.constant 0 : index
      %c0_52 = arith.constant 0 : index
      %93 = vector.load %arg8[%c0_49, %c0_50, %c0_51, %c0_52] : memref<1x3x8x1xf32, #tpu.memory_space<vmem>>, vector<1x3x8x1xf32>
      tpu.vector_store %arg8[%c0_49, %c0_50, %c0_51, %c0_52], %92 {strides = array<i32>} : memref<1x3x8x1xf32, #tpu.memory_space<vmem>>, vector<1x3x8x1xf32>,
    } else {
    }
    %c1_i32 = arith.constant 1 : i32
    %3 = arith.muli %arg0, %c1_i32 : i32
    %4 = arith.addi %3, %arg1 : i32
    %c8_i32 = arith.constant 8 : i32
    %5 = arith.muli %4, %c8_i32 : i32
    %6 = tpu.assume_multiple %5, 8 : i32
    %7 = arith.index_cast %6 : i32 to index
    %c0 = arith.constant 0 : index
    %8 = vector.load %arg2[%7, %c0] : memref<8x1xi32, #tpu.memory_space<vmem>>, vector<8x1xi32>
    %9 = tpu.iota {dimensions = array<i32: 1>} : vector<8x10xi32>
    %10 = vector.broadcast %8 : vector<8x1xi32> to vector<8x10xi32>
    %11 = arith.cmpi eq, %9, %10 : vector<8x10xi32>
    %12 = tpu.iota {dimensions = array<i32: 0>} : vector<8x1xi32>
    %13 = vector.broadcast %5 : i32 to vector<8x1xi32>
    %14 = arith.addi %13, %12 : vector<8x1xi32>
    %c8_i32_1 = arith.constant 8 : i32
    %15 = vector.broadcast %c8_i32_1 : i32 to vector<8x1xi32>
    %16 = arith.cmpi slt, %14, %15 : vector<8x1xi32>
    %c0_2 = arith.constant 0 : index
    %c0_3 = arith.constant 0 : index
    %17 = vector.load %arg3[%c0_2, %c0_3] : memref<8x10xf32, #tpu.memory_space<vmem>>, vector<8x10xf32>
    %c0_4 = arith.constant 0 : index
    %c0_5 = arith.constant 0 : index
    %18 = vector.load %arg4[%c0_4, %c0_5] : memref<8x10xf32, #tpu.memory_space<vmem>>, vector<8x10xf32>
    %c0_6 = arith.constant 0 : index
    %c0_7 = arith.constant 0 : index
    %19 = vector.load %arg6[%c0_6, %c0_7] : memref<1x10xf32, #tpu.memory_space<vmem>>, vector<1x10xf32>
    %20 = vector.broadcast %19 : vector<1x10xf32> to vector<8x10xf32>
    %21 = arith.addf %18, %20 : vector<8x10xf32>
    %c0_8 = arith.constant 0 : index
    %c0_9 = arith.constant 0 : index
    %22 = vector.load %arg5[%c0_8, %c0_9] : memref<8x10xf32, #tpu.memory_space<vmem>>, vector<8x10xf32>
    %c0_10 = arith.constant 0 : index
    %c0_11 = arith.constant 0 : index
    %23 = vector.load %arg7[%c0_10, %c0_11] : memref<1x10xf32, #tpu.memory_space<vmem>>, vector<1x10xf32>
    %24 = vector.broadcast %23 : vector<1x10xf32> to vector<8x10xf32>
    %25 = arith.addf %22, %24 : vector<8x10xf32>
    %c0_12 = arith.constant 0 : index
    %c0_13 = arith.constant 0 : index
    %c0_14 = arith.constant 0 : index
    %c0_15 = arith.constant 0 : index
    %26 = vector.load %arg8[%c0_12, %c0_13, %c0_14, %c0_15] : memref<1x3x8x1xf32, #tpu.memory_space<vmem>>, vector<1x1x8x1xf32>
    %27 = vector.shape_cast %26 : vector<1x1x8x1xf32> to vector<8x1xf32>
    %cst = arith.constant dense<0xFF800000> : vector<8xf32>
    %28 = vector.multi_reduction <maximumf>, %17, %cst [1] : vector<8x10xf32> to vector<8xf32>
    %29 = vector.shape_cast %28 : vector<8xf32> to vector<8x1xf32>
    %30 = vector.broadcast %29 : vector<8x1xf32> to vector<8x10xf32>
    %31 = arith.subf %17, %30 : vector<8x10xf32>
    %32 = math.exp %31 : vector<8x10xf32>
    %cst_16 = arith.constant dense<0.000000e+00> : vector<8xf32>
    %33 = vector.multi_reduction <add>, %32, %cst_16 [1] : vector<8x10xf32> to vector<8xf32>
    %34 = vector.shape_cast %33 : vector<8xf32> to vector<8x1xf32>
    %35 = math.log %34 : vector<8x1xf32>
    %36 = arith.addf %29, %35 : vector<8x1xf32>
    %cst_17 = arith.constant 0.000000e+00 : f32
    %37 = vector.broadcast %cst_17 : f32 to vector<8x10xf32>
    %38 = arith.select %11, %17, %37 : vector<8x10xi1>, vector<8x10xf32>
    %cst_18 = arith.constant dense<0.000000e+00> : vector<8xf32>
    %39 = vector.multi_reduction <add>, %38, %cst_18 [1] : vector<8x10xf32> to vector<8xf32>
    %40 = vector.shape_cast %39 : vector<8xf32> to vector<8x1xf32>
    %41 = arith.subf %36, %40 : vector<8x1xf32>
    %cst_19 = arith.constant 0.000000e+00 : f32
    %42 = vector.broadcast %cst_19 : f32 to vector<8x1xf32>
    %43 = arith.select %16, %41, %42 : vector<8x1xi1>, vector<8x1xf32>
    %44 = arith.addf %27, %43 : vector<8x1xf32>
    %c0_20 = arith.constant 0 : index
    %c0_21 = arith.constant 0 : index
    %c0_22 = arith.constant 0 : index
    %c0_23 = arith.constant 0 : index
    %45 = vector.load %arg8[%c0_20, %c0_21, %c0_22, %c0_23] : memref<1x3x8x1xf32, #tpu.memory_space<vmem>>, vector<1x1x8x1xf32>
    %46 = vector.shape_cast %45 : vector<1x1x8x1xf32> to vector<8x1xf32>
    %47 = vector.shape_cast %44 : vector<8x1xf32> to vector<1x1x8x1xf32>
    tpu.vector_store %arg8[%c0_20, %c0_21, %c0_22, %c0_23], %47 {strides = array<i32>} : memref<1x3x8x1xf32, #tpu.memory_space<vmem>>, vector<1x1x8x1xf32>,
    %c0_24 = arith.constant 0 : index
    %c1 = arith.constant 1 : index
    %c0_25 = arith.constant 0 : index
    %c0_26 = arith.constant 0 : index
    %48 = vector.load %arg8[%c0_24, %c1, %c0_25, %c0_26] : memref<1x3x8x1xf32, #tpu.memory_space<vmem>>, vector<1x1x8x1xf32>
    %49 = vector.shape_cast %48 : vector<1x1x8x1xf32> to vector<8x1xf32>
    %cst_27 = arith.constant dense<0xFF800000> : vector<8xf32>
    %50 = vector.multi_reduction <maximumf>, %21, %cst_27 [1] : vector<8x10xf32> to vector<8xf32>
    %51 = vector.shape_cast %50 : vector<8xf32> to vector<8x1xf32>
    %52 = vector.broadcast %51 : vector<8x1xf32> to vector<8x10xf32>
    %53 = arith.subf %21, %52 : vector<8x10xf32>
    %54 = math.exp %53 : vector<8x10xf32>
    %cst_28 = arith.constant dense<0.000000e+00> : vector<8xf32>
    %55 = vector.multi_reduction <add>, %54, %cst_28 [1] : vector<8x10xf32> to vector<8xf32>
    %56 = vector.shape_cast %55 : vector<8xf32> to vector<8x1xf32>
    %57 = math.log %56 : vector<8x1xf32>
    %58 = arith.addf %51, %57 : vector<8x1xf32>
    %cst_29 = arith.constant 0.000000e+00 : f32
    %59 = vector.broadcast %cst_29 : f32 to vector<8x10xf32>
    %60 = arith.select %11, %21, %59 : vector<8x10xi1>, vector<8x10xf32>
    %cst_30 = arith.constant dense<0.000000e+00> : vector<8xf32>
    %61 = vector.multi_reduction <add>, %60, %cst_30 [1] : vector<8x10xf32> to vector<8xf32>
    %62 = vector.shape_cast %61 : vector<8xf32> to vector<8x1xf32>
    %63 = arith.subf %58, %62 : vector<8x1xf32>
    %cst_31 = arith.constant 0.000000e+00 : f32
    %64 = vector.broadcast %cst_31 : f32 to vector<8x1xf32>
    %65 = arith.select %16, %63, %64 : vector<8x1xi1>, vector<8x1xf32>
    %66 = arith.addf %49, %65 : vector<8x1xf32>
    %c0_32 = arith.constant 0 : index
    %c1_33 = arith.constant 1 : index
    %c0_34 = arith.constant 0 : index
    %c0_35 = arith.constant 0 : index
    %67 = vector.load %arg8[%c0_32, %c1_33, %c0_34, %c0_35] : memref<1x3x8x1xf32, #tpu.memory_space<vmem>>, vector<1x1x8x1xf32>
    %68 = vector.shape_cast %67 : vector<1x1x8x1xf32> to vector<8x1xf32>
    %69 = vector.shape_cast %66 : vector<8x1xf32> to vector<1x1x8x1xf32>
    tpu.vector_store %arg8[%c0_32, %c1_33, %c0_34, %c0_35], %69 {strides = array<i32>} : memref<1x3x8x1xf32, #tpu.memory_space<vmem>>, vector<1x1x8x1xf32>,
    %c0_36 = arith.constant 0 : index
    %c2 = arith.constant 2 : index
    %c0_37 = arith.constant 0 : index
    %c0_38 = arith.constant 0 : index
    %70 = vector.load %arg8[%c0_36, %c2, %c0_37, %c0_38] : memref<1x3x8x1xf32, #tpu.memory_space<vmem>>, vector<1x1x8x1xf32>
    %71 = vector.shape_cast %70 : vector<1x1x8x1xf32> to vector<8x1xf32>
    %cst_39 = arith.constant dense<0xFF800000> : vector<8xf32>
    %72 = vector.multi_reduction <maximumf>, %25, %cst_39 [1] : vector<8x10xf32> to vector<8xf32>
    %73 = vector.shape_cast %72 : vector<8xf32> to vector<8x1xf32>
    %74 = vector.broadcast %73 : vector<8x1xf32> to vector<8x10xf32>
    %75 = arith.subf %25, %74 : vector<8x10xf32>
    %76 = math.exp %75 : vector<8x10xf32>
    %cst_40 = arith.constant dense<0.000000e+00> : vector<8xf32>
    %77 = vector.multi_reduction <add>, %76, %cst_40 [1] : vector<8x10xf32> to vector<8xf32>
    %78 = vector.shape_cast %77 : vector<8xf32> to vector<8x1xf32>
    %79 = math.log %78 : vector<8x1xf32>
    %80 = arith.addf %73, %79 : vector<8x1xf32>
    %cst_41 = arith.constant 0.000000e+00 : f32
    %81 = vector.broadcast %cst_41 : f32 to vector<8x10xf32>
    %82 = arith.select %11, %25, %81 : vector<8x10xi1>, vector<8x10xf32>
    %cst_42 = arith.constant dense<0.000000e+00> : vector<8xf32>
    %83 = vector.multi_reduction <add>, %82, %cst_42 [1] : vector<8x10xf32> to vector<8xf32>
    %84 = vector.shape_cast %83 : vector<8xf32> to vector<8x1xf32>
    %85 = arith.subf %80, %84 : vector<8x1xf32>
    %cst_43 = arith.constant 0.000000e+00 : f32
    %86 = vector.broadcast %cst_43 : f32 to vector<8x1xf32>
    %87 = arith.select %16, %85, %86 : vector<8x1xi1>, vector<8x1xf32>
    %88 = arith.addf %71, %87 : vector<8x1xf32>
    %c0_44 = arith.constant 0 : index
    %c2_45 = arith.constant 2 : index
    %c0_46 = arith.constant 0 : index
    %c0_47 = arith.constant 0 : index
    %89 = vector.load %arg8[%c0_44, %c2_45, %c0_46, %c0_47] : memref<1x3x8x1xf32, #tpu.memory_space<vmem>>, vector<1x1x8x1xf32>
    %90 = vector.shape_cast %89 : vector<1x1x8x1xf32> to vector<8x1xf32>
    %91 = vector.shape_cast %88 : vector<8x1xf32> to vector<1x1x8x1xf32>
    tpu.vector_store %arg8[%c0_44, %c2_45, %c0_46, %c0_47], %91 {strides = array<i32>} : memref<1x3x8x1xf32, #tpu.memory_space<vmem>>, vector<1x1x8x1xf32>,
    return
  }
  func.func @transform_0(%arg0: i32, %arg1: i32) -> (i32, i32) {
    %c0_i32 = arith.constant 0 : i32
    %c0_i32_0 = arith.constant 0 : i32
    %c0_i32_1 = arith.constant 0 : i32
    return %c0_i32, %c0_i32_0 : i32, i32
  }
  func.func @transform_1(%arg0: i32, %arg1: i32) -> (i32, i32) {
    %c1_i32 = arith.constant 1 : i32
    %0 = arith.muli %arg0, %c1_i32 : i32
    %1 = arith.addi %0, %arg1 : i32
    %c0_i32 = arith.constant 0 : i32
    %c0_i32_0 = arith.constant 0 : i32
    return %1, %c0_i32 : i32, i32
  }
  func.func @transform_2(%arg0: i32, %arg1: i32) -> (i32, i32) {
    %c1_i32 = arith.constant 1 : i32
    %0 = arith.muli %arg0, %c1_i32 : i32
    %1 = arith.addi %0, %arg1 : i32
    %c0_i32 = arith.constant 0 : i32
    %c0_i32_0 = arith.constant 0 : i32
    return %1, %c0_i32 : i32, i32
  }
  func.func @transform_3(%arg0: i32, %arg1: i32) -> (i32, i32) {
    %c1_i32 = arith.constant 1 : i32
    %0 = arith.muli %arg0, %c1_i32 : i32
    %1 = arith.addi %0, %arg1 : i32
    %c0_i32 = arith.constant 0 : i32
    %c0_i32_0 = arith.constant 0 : i32
    return %1, %c0_i32 : i32, i32
  }
  func.func @transform_4(%arg0: i32, %arg1: i32) -> (i32, i32) {
    %c0_i32 = arith.constant 0 : i32
    %c0_i32_0 = arith.constant 0 : i32
    %c0_i32_1 = arith.constant 0 : i32
    return %c0_i32, %c0_i32_0 : i32, i32
  }
  func.func @transform_5(%arg0: i32, %arg1: i32) -> (i32, i32) {
    %c0_i32 = arith.constant 0 : i32
    %c0_i32_0 = arith.constant 0 : i32
    %c0_i32_1 = arith.constant 0 : i32
    return %c0_i32, %c0_i32_0 : i32, i32
  }
  func.func @transform_6(%arg0: i32, %arg1: i32) -> (i32, i32, i32, i32) {
    %c0_i32 = arith.constant 0 : i32
    %c0_i32_0 = arith.constant 0 : i32
    %c0_i32_1 = arith.constant 0 : i32
    %c0_i32_2 = arith.constant 0 : i32
    return %arg0, %c0_i32, %c0_i32_0, %c0_i32_1 : i32, i32, i32, i32
  }
}

</mosaic_0001>

<bundles_post_ra>
// kernel: tpu_custom_call.1
= control target key start
LH: loop header
LB: loop body
LE: loop exit
PB: predicated region body
PF: predicated region fallthrough
CT: control target
= control target key end

     0   :  { %11 = vsyncpa [#allocation3], 0  ;;  %s366_s0 = inlined_call_operand.vmem [shape: s32[8,1], index: 0, kind: input, shape index: {}]   ;;  %s367_s1 = inlined_call_operand.vmem [shape: f32[8,10], index: 1, kind: input, shape index: {}]   ;;  %s368_s2 = inlined_call_operand.hbm [shape: f32[8,10], index: 2, kind: input, shape index: {}]   ;;  %s369_s3 = inlined_call_operand.hbm [shape: f32[8,10], index: 3, kind: input, shape index: {}]   ;;  %s370_s4 = inlined_call_operand.vmem [shape: f32[1,10], index: 4, kind: input, shape index: {}]   ;;  %s371_s5 = inlined_call_operand.vmem [shape: f32[1,10], index: 5, kind: input, shape index: {}]   ;;  %s372_s6 = inlined_call_operand.vmem [shape: f32[1,3,8,1], index: 6, kind: output, shape index: {}]  }
   0x1   :  { %s31_s23 = sshll.u32 %s368_s2, 4  ;;  %s32_s23 = int_to_ptr.hbm [resolvable:$true] %s31_s23 }
   0x2   :  { %12 = vsyncpa [#allocation5], 0  ;;  %s267_s24 = smov [#allocation2]   ;;  %s45_s28 = sshll.u32 %s369_s3, 4  ;;  %s46_s28 = int_to_ptr.hbm [resolvable:$true] %s45_s28 }
   0x3   :  { %s33_s25 = sshll.u32 %s267_s24, 4  ;;  %s268_s29 = smov [#allocation4]   ;;  %s34_s25 = int_to_ptr.vmem [resolvable:$true] %s33_s25 }
   0x4   :  { %36 = dma.hbm_to_vmem [thread:$0]  %s32_s23, 128, %s34_s25, [#allocation3]  }
   0x5   :  { %s47_s30 = sshll.u32 %s268_s29, 4  ;;  %s48_s30 = int_to_ptr.vmem [resolvable:$true] %s47_s30 }
   0x6   :  { %50 = dma.hbm_to_vmem [thread:$0]  %s46_s28, 128, %s48_s30, [#allocation5]  }
   0x7   :  { %263 = dma.done.wait [#allocation3], 128  }
   0x8   :  { %264 = vsyncadd [#allocation3], 4294967168 }
   0x9   :  { %265 = dma.done.wait [#allocation5], 128  }
   0xa   :  { %266 = vsyncadd [#allocation5], 4294967168  ;;  %v269_v0 = vmov 0   ;;  %vm113_vm0 = vcmask 80896   ;;  %v99_v1 = vld [vmem:[%s367_s1] sm:$0xff]  ;;  %v106_v2 = vld [vmem:[#allocation4] sm:$0xff]  ;;  %v88_v27 = vlaneseq }
   0xb   :  { %199 = vset.pattern.permute.xlu1 %v269_v0  ;;  %200 = vset.pattern.permute.xlu0 %v269_v0  ;;  %v114_v3 = vsel %vm113_vm0, %v99_v1, -inf  ;;  %v201_v4 = vld [vmem:[%s371_s5] ss:$0 sm:$0xff]  ;;  %vm80_vm2 = vcmask 7168   ;;  %v270_v36 = vmov 0.0  }
   0xc   :  { %v100_v5 = vld [vmem:[#allocation2] sm:$0xff]  ;;  %115 = vmax.xlane.f32.xlu0 %v114_v3  ;;  %v111_v7 = vadd.f32 %v201_v4, %v106_v2  ;;  %v89_v28 = vand.u32 127, %v88_v27  ;;  %82 = vst.msk [vmem:[%s372_s6 + $0x8] sm:$0xff] %vm80_vm2, %v270_v36 }
   0xd   :  { %v202_v6 = vld [vmem:[%s370_s4] ss:$0 sm:$0xff]  ;;  %81 = vst.msk [vmem:[%s372_s6] sm:$0xff] %vm80_vm2, %v270_v36 }
   0xe   :  { %v105_v8 = vadd.f32 %v202_v6, %v100_v5  ;;  %v159_v9 = vsel %vm113_vm0, %v111_v7, -inf  ;;  %v87_v11 = vld [vmem:[%s366_s0] sm:$0xff]  ;;  %83 = vst.msk [vmem:[%s372_s6 + $0x10] sm:$0xff] %vm80_vm2, %v270_v36 }
   0xf   :  { %160 = vmax.xlane.f32.xlu1 %v159_v9 }
  0x10   :  { %v137_v10 = vsel %vm113_vm0, %v105_v8, -inf }
  0x13   :  { %v191_v48 = vld [vmem:[%s372_s6 + $0x8] sm:$0xff] }
  0x14   :  { %138 = vmax.xlane.f32.xlu0 %v137_v10  ;;  %v112_v50 = vld [vmem:[%s372_s6] sm:$0xff] }
  0x15   :  { %v193_v58 = vld [vmem:[%s372_s6 + $0x10] sm:$0xff] }
  0x28   :  { %91 = vperm.xlu1 %199, %v87_v11  }
  0x7f   :  { %v116_v12 = vpop.xlane.xlu0 %115 }
  0x80   :  { %v117_v13 = vsub.f32 %v99_v1, %v116_v12 }
  0x82   :  { %v118_v14 = vmul.f32 1.442695, %v117_v13  ;;  %v161_v15 = vpop.xlane.xlu1 %160 }
  0x83   :  { %v162_v16 = vsub.f32 %v111_v7, %v161_v15 }
  0x84   :  { %203 = vpow2.f32 %v118_v14 }
  0x85   :  { %v163_v17 = vmul.f32 1.442695, %v162_v16 }
  0x87   :  { %v139_v18 = vpop.xlane.xlu0 %138  ;;  %205 = vpow2.f32 %v163_v17 }
  0x88   :  { %v140_v19 = vsub.f32 %v105_v8, %v139_v18 }
  0x8a   :  { %v204_v20 = vpop.eup %203  ;;  %v141_v21 = vmul.f32 1.442695, %v140_v19 }
  0x8b   :  { %v120_v22 = vsel %vm113_vm0, %v204_v20, 0.0 }
  0x8c   :  { %207 = vpow2.f32 %v141_v21  ;;  %121 = vadd.xlane.f32.xlu2 %v120_v22 }
  0x8d   :  { %v206_v23 = vpop.eup %205 }
  0x8e   :  { %v165_v24 = vsel %vm113_vm0, %v206_v23, 0.0 }
  0x8f   :  { %166 = vadd.xlane.f32.xlu0 %v165_v24 }
  0x92   :  { %v208_v25 = vpop.eup %207 }
  0x93   :  { %v143_v26 = vsel %vm113_vm0, %v208_v25, 0.0 }
  0x94   :  { %144 = vadd.xlane.f32.xlu2 %v143_v26 }
  0x9a   :  { %v92_v29 = vpop.permute.xlu1 %91 }
  0x9b   :  { %vm93_vm1 = vcmp.eq.s32.totalorder %v89_v28, %v92_v29 }
  0x9c   :  { %v149_v30 = vsel %vm93_vm1, %v105_v8, 0.0  ;;  %v126_v31 = vsel %vm93_vm1, %v99_v1, 0.0  ;;  %v171_v34 = vsel %vm93_vm1, %v111_v7, 0.0 }
  0x9d   :  { %v150_v32 = vsel %vm113_vm0, %v149_v30, 0.0  ;;  %v127_v33 = vsel %vm113_vm0, %v126_v31, 0.0  ;;  %v172_v35 = vsel %vm113_vm0, %v171_v34, 0.0 }
  0x9e   :  { %151 = vadd.xlane.f32.xlu0 %v150_v32  ;;  %128 = vadd.xlane.f32.xlu2 %v127_v33 }
  0xa6   :  { %173 = vadd.xlane.f32.xlu2 %v172_v35 }
  0xff   :  { %v122_v37 = vpop.xlane.xlu2 %121 }
 0x100   :  { %209 = vlog2.f32 %v122_v37 }
 0x102   :  { %v167_v39 = vpop.xlane.xlu0 %166 }
 0x106   :  { %v210_v40 = vpop.eup %209 }
 0x107   :  { %v145_v38 = vpop.xlane.xlu2 %144  ;;  %v124_v41 = vmul.f32 0.6931472, %v210_v40 }
 0x108   :  { %211 = vlog2.f32 %v145_v38 }
 0x109   :  { %213 = vlog2.f32 %v167_v39  ;;  %v125_v45 = vadd.f32 %v124_v41, %v116_v12 }
 0x10e   :  { %v212_v42 = vpop.eup %211 }
 0x10f   :  { %v147_v43 = vmul.f32 0.6931472, %v212_v42  ;;  %v214_v46 = vpop.eup %213 }
 0x110   :  { %v169_v53 = vmul.f32 0.6931472, %v214_v46 }
 0x111   :  { %v148_v44 = vadd.f32 %v147_v43, %v139_v18  ;;  %v152_v47 = vpop.xlane.xlu0 %151  ;;  %v129_v49 = vpop.xlane.xlu2 %128 }
 0x112   :  { %v130_v52 = vsub.f32 %v125_v45, %v129_v49  ;;  %v170_v56 = vadd.f32 %v169_v53, %v161_v15 }
 0x113   :  { %v153_v51 = vsub.f32 %v148_v44, %v152_v47 }
 0x114   :  { %v132_v55 = vadd.f32 %v130_v52, %v112_v50 }
 0x115   :  { %v155_v54 = vadd.f32 %v191_v48, %v153_v51 }
 0x116   :  { %134 = vst.msk [vmem:[%s372_s6] sm:$0xff] %vm80_vm2, %v132_v55 }
 0x117   :  { %192 = vst.msk [vmem:[%s372_s6 + $0x8] sm:$0xff] %vm80_vm2, %v155_v54 }
 0x119   :  { %v174_v57 = vpop.xlane.xlu2 %173 }
 0x11a   :  { %v175_v59 = vsub.f32 %v170_v56, %v174_v57 }
 0x11c   :  { %v177_v60 = vadd.f32 %v193_v58, %v175_v59 }
 0x11e   :  { %194 = vst.msk [vmem:[%s372_s6 + $0x10] sm:$0xff] %vm80_vm2, %v177_v60 }
 0x11f   :  { %183 = vsyncpa [#allocation3], 1 }
 0x120   :  { %184 = vsyncpa [#allocation5], 1 }

</bundles_post_ra>
